<compile_context>
chip_gen: v6e
topology: v6e:2x2x1
jax: 0.10.0
libtpu: 0.0.40
codegen_flags: <defaults>
</compile_context>

<pallas_src>
import jax
import jax.numpy as jnp
from jax.experimental import pallas as pl
from jax.experimental.pallas import tpu as pltpu


def mlp_kernel(x_ref, w1_ref, b1_ref, w2_ref, b2_ref, o_ref):
    # hidden layer: (tb, D_in) @ (D_in, H) + (1, H)  -> ReLU  (f32 accumulation)
    h = jnp.dot(x_ref[...], w1_ref[...], preferred_element_type=jnp.float32)
    h = jnp.maximum(h + b1_ref[...].astype(jnp.float32), 0.0)
    # TODO(synk): dropout implemented as identity (inference / eval mode); training-mode
    # dropout would need pltpu.prng_seed + pltpu.prng_random_bits and 1/(1-p) scaling.
    # output layer: (tb, H) @ (H, D_out) + (1, D_out)
    out = jnp.dot(h.astype(w2_ref.dtype), w2_ref[...],
                  preferred_element_type=jnp.float32)
    out = out + b2_ref[...].astype(jnp.float32)
    o_ref[...] = out.astype(o_ref.dtype)


def _round_up(n, m):
    return ((n + m - 1) // m) * m


def _pick_tile_b(batch):
    """Large batch tile (cap 512), but keep >=2 grid steps when batch allows (v7x)."""
    if batch <= 8:
        return 8
    if batch < 16:
        return _round_up(batch, 8)
    return min(512, _round_up(pl.cdiv(batch, 2), 8))


def simple_classifier_forward(x, w1, b1, w2, b2, *, tile_b=None):
    """x: (B, D_in); w1: (D_in, H); b1: (1, H); w2: (H, D_out); b2: (1, D_out)."""
    B, D_in = x.shape
    H = w1.shape[1]
    D_out = w2.shape[1]

    if tile_b is None:
        tile_b = _pick_tile_b(B)
    tile_b = max(8, _round_up(min(tile_b, max(B, 8)), 8))

    # Pad batch to a multiple of tile_b (no divisibility requirement for callers).
    B_pad = _round_up(B, tile_b)
    if B_pad != B:
        x = jnp.pad(x, ((0, B_pad - B), (0, 0)))

    grid = (B_pad // tile_b,)

    itemsize = x.dtype.itemsize
    weight_bytes = (w1.size * w1.dtype.itemsize + b1.size * b1.dtype.itemsize
                    + w2.size * w2.dtype.itemsize + b2.size * b2.dtype.itemsize)
    # 2x-buffered x/out tiles + single-buffered weights + hidden activation, with headroom.
    vmem_needed = (2 * tile_b * D_in * itemsize
                   + 2 * tile_b * D_out * itemsize
                   + weight_bytes
                   + tile_b * H * 4)
    vmem_limit = int(min(max(2 * vmem_needed, 8 << 20), 48 << 20))

    flops = 2 * B_pad * (D_in * H + H * D_out)
    bytes_accessed = (B_pad * D_in * itemsize
                      + weight_bytes
                      + B_pad * D_out * itemsize)

    out = pl.pallas_call(
        mlp_kernel,
        out_shape=jax.ShapeDtypeStruct((B_pad, D_out), x.dtype),
        grid_spec=pl.GridSpec(
            grid=grid,
            in_specs=[
                # x tile streams over the batch axis (default double-buffering).
                pl.BlockSpec((tile_b, D_in), lambda i: (i, 0)),
                # Grid-invariant weights/biases: single-buffered to halve VMEM.
                pl.BlockSpec((D_in, H), lambda i: (0, 0),
                             pipeline_mode=pl.Buffered(1)),
                pl.BlockSpec((1, H), lambda i: (0, 0),
                             pipeline_mode=pl.Buffered(1)),
                pl.BlockSpec((H, D_out), lambda i: (0, 0),
                             pipeline_mode=pl.Buffered(1)),
                pl.BlockSpec((1, D_out), lambda i: (0, 0),
                             pipeline_mode=pl.Buffered(1)),
            ],
            out_specs=pl.BlockSpec((tile_b, D_out), lambda i: (i, 0)),
        ),
        compiler_params=pltpu.CompilerParams(
            dimension_semantics=("parallel",),
            vmem_limit_bytes=vmem_limit,
        ),
        cost_estimate=pl.CostEstimate(
            flops=flops, transcendentals=0, bytes_accessed=bytes_accessed),
    )(x, w1, b1, w2, b2)

    return out[:B] if B_pad != B else out


if __name__ == "__main__":
    # Small shapes consistent with the module's forward pass.
    # batch=100 exercises the tail-padding path and gives >=2 parallel grid steps.
    batch = 100
    input_dim = 64
    hidden_dim = 32
    output_dim = 8
    dropout_value = 0.3  # unused at inference (identity)

    key = jax.random.PRNGKey(0)
    kx, k1, kb1, k2, kb2 = jax.random.split(key, 5)

    x = jax.random.normal(kx, (batch, input_dim), dtype=jnp.float32)

    # Deterministic parameter init (uniform, PyTorch-Linear-like scale).
    lim1 = 1.0 / (input_dim ** 0.5)
    w1 = jax.random.uniform(k1, (input_dim, hidden_dim), jnp.float32, -lim1, lim1)
    b1 = jax.random.uniform(kb1, (1, hidden_dim), jnp.float32, -lim1, lim1)
    lim2 = 1.0 / (hidden_dim ** 0.5)
    w2 = jax.random.uniform(k2, (hidden_dim, output_dim), jnp.float32, -lim2, lim2)
    b2 = jax.random.uniform(kb2, (1, output_dim), jnp.float32, -lim2, lim2)

    out = simple_classifier_forward(x, w1, b1, w2, b2)
    out = jax.block_until_ready(out)

    # Pure-JAX reference check.
    h_ref = jnp.maximum(x @ w1 + b1, 0.0)
    ref = h_ref @ w2 + b2
    assert out.shape == (batch, output_dim)
    assert jnp.allclose(out, ref, atol=1e-5, rtol=1e-5), "mismatch vs reference"

    print("KERNEL_OK")
</pallas_src>

<mosaic_0001>
module attributes {stable_mosaic.version = 11 : i64} {
  func.func @mlp_kernel(%arg0: i32, %arg1: memref<56x64xf32, #tpu.memory_space<vmem>>, %arg2: memref<64x32xf32, #tpu.memory_space<vmem>>, %arg3: memref<1x32xf32, #tpu.memory_space<vmem>>, %arg4: memref<32x8xf32, #tpu.memory_space<vmem>>, %arg5: memref<1x8xf32, #tpu.memory_space<vmem>>, %arg6: memref<56x8xf32, #tpu.memory_space<vmem>>) attributes {dimension_semantics = [#tpu.dimension_semantics<parallel>], iteration_bounds = array<i64: 2>, scalar_prefetch = 0 : i64, scratch_operands = 0 : i64, tpu.core_type = #tpu.core_type<tc>, window_params = [{transform_indices = @transform_0, window_bounds = array<i64: 56, 64>}, {pipeline_mode = #tpu.pipeline_mode<synchronous>, transform_indices = @transform_1, window_bounds = array<i64: 64, 32>}, {pipeline_mode = #tpu.pipeline_mode<synchronous>, transform_indices = @transform_2, window_bounds = array<i64: 1, 32>}, {pipeline_mode = #tpu.pipeline_mode<synchronous>, transform_indices = @transform_3, window_bounds = array<i64: 32, 8>}, {pipeline_mode = #tpu.pipeline_mode<synchronous>, transform_indices = @transform_4, window_bounds = array<i64: 1, 8>}, {transform_indices = @transform_5, window_bounds = array<i64: 56, 8>}]} {
    %c0 = arith.constant 0 : index
    %c0_0 = arith.constant 0 : index
    %0 = vector.load %arg1[%c0, %c0_0] : memref<56x64xf32, #tpu.memory_space<vmem>>, vector<56x64xf32>
    %c0_1 = arith.constant 0 : index
    %c0_2 = arith.constant 0 : index
    %1 = vector.load %arg2[%c0_1, %c0_2] : memref<64x32xf32, #tpu.memory_space<vmem>>, vector<64x32xf32>
    %cst = arith.constant dense<0.000000e+00> : vector<56x32xf32>
    %2 = tpu.matmul %0, %1, %cst {dimension_numbers = #tpu.dot_dimension_numbers<[1], [0], [0], [1], [0, 0, 1, 1], [], []>} : vector<56x64xf32>, vector<64x32xf32>, vector<56x32xf32> -> vector<56x32xf32>
    %c0_3 = arith.constant 0 : index
    %c0_4 = arith.constant 0 : index
    %3 = vector.load %arg3[%c0_3, %c0_4] : memref<1x32xf32, #tpu.memory_space<vmem>>, vector<1x32xf32>
    %4 = vector.broadcast %3 : vector<1x32xf32> to vector<56x32xf32>
    %5 = arith.addf %2, %4 : vector<56x32xf32>
    %cst_5 = arith.constant 0.000000e+00 : f32
    %6 = vector.broadcast %cst_5 : f32 to vector<56x32xf32>
    %7 = arith.maximumf %5, %6 : vector<56x32xf32>
    %c0_6 = arith.constant 0 : index
    %c0_7 = arith.constant 0 : index
    %8 = vector.load %arg4[%c0_6, %c0_7] : memref<32x8xf32, #tpu.memory_space<vmem>>, vector<32x8xf32>
    %cst_8 = arith.constant dense<0.000000e+00> : vector<56x8xf32>
    %9 = tpu.matmul %7, %8, %cst_8 {dimension_numbers = #tpu.dot_dimension_numbers<[1], [0], [0], [1], [0, 0, 1, 1], [], []>} : vector<56x32xf32>, vector<32x8xf32>, vector<56x8xf32> -> vector<56x8xf32>
    %c0_9 = arith.constant 0 : index
    %c0_10 = arith.constant 0 : index
    %10 = vector.load %arg5[%c0_9, %c0_10] : memref<1x8xf32, #tpu.memory_space<vmem>>, vector<1x8xf32>
    %11 = vector.broadcast %10 : vector<1x8xf32> to vector<56x8xf32>
    %12 = arith.addf %9, %11 : vector<56x8xf32>
    %c0_11 = arith.constant 0 : index
    %c0_12 = arith.constant 0 : index
    %13 = vector.load %arg6[%c0_11, %c0_12] : memref<56x8xf32, #tpu.memory_space<vmem>>, vector<56x8xf32>
    tpu.vector_store %arg6[%c0_11, %c0_12], %12 {strides = array<i32>} : memref<56x8xf32, #tpu.memory_space<vmem>>, vector<56x8xf32>,
    return
  }
  func.func @transform_0(%arg0: i32) -> (i32, i32) {
    %c0_i32 = arith.constant 0 : i32
    %c0_i32_0 = arith.constant 0 : i32
    return %arg0, %c0_i32 : i32, i32
  }
  func.func @transform_1(%arg0: i32) -> (i32, i32) {
    %c0_i32 = arith.constant 0 : i32
    %c0_i32_0 = arith.constant 0 : i32
    %c0_i32_1 = arith.constant 0 : i32
    return %c0_i32, %c0_i32_0 : i32, i32
  }
  func.func @transform_2(%arg0: i32) -> (i32, i32) {
    %c0_i32 = arith.constant 0 : i32
    %c0_i32_0 = arith.constant 0 : i32
    %c0_i32_1 = arith.constant 0 : i32
    return %c0_i32, %c0_i32_0 : i32, i32
  }
  func.func @transform_3(%arg0: i32) -> (i32, i32) {
    %c0_i32 = arith.constant 0 : i32
    %c0_i32_0 = arith.constant 0 : i32
    %c0_i32_1 = arith.constant 0 : i32
    return %c0_i32, %c0_i32_0 : i32, i32
  }
  func.func @transform_4(%arg0: i32) -> (i32, i32) {
    %c0_i32 = arith.constant 0 : i32
    %c0_i32_0 = arith.constant 0 : i32
    %c0_i32_1 = arith.constant 0 : i32
    return %c0_i32, %c0_i32_0 : i32, i32
  }
  func.func @transform_5(%arg0: i32) -> (i32, i32) {
    %c0_i32 = arith.constant 0 : i32
    %c0_i32_0 = arith.constant 0 : i32
    return %arg0, %c0_i32 : i32, i32
  }
}

</mosaic_0001>

<bundles_post_ra>
// kernel: tpu_custom_call.1
= control target key start
LH: loop header
LB: loop body
LE: loop exit
PB: predicated region body
PF: predicated region fallthrough
CT: control target
= control target key end

     0   :  { %s743_s18 = smov 0   ;;  %s870_s0 = inlined_call_operand.vmem [shape: f32[112,64], index: 0, kind: input, shape index: {}]   ;;  %s871_s1 = inlined_call_operand.vmem [shape: f32[64,32], index: 1, kind: input, shape index: {}]   ;;  %s872_s2 = inlined_call_operand.vmem [shape: f32[1,32], index: 2, kind: input, shape index: {}]   ;;  %s873_s3 = inlined_call_operand.vmem [shape: f32[32,8], index: 3, kind: input, shape index: {}]   ;;  %s874_s4 = inlined_call_operand.vmem [shape: f32[1,8], index: 4, kind: input, shape index: {}]   ;;  %s875_s5 = inlined_call_operand.vmem [shape: f32[112,8], index: 5, kind: output, shape index: {}]  }
   0x1 LB: > { %s576_s19 = sadd.s32 4294967295, %s709_s18   ;;  %p580_p0 = scmp.ge.s32.totalorder %s709_s18, 1  ;;  %s709_s18 = sphi %s743_s18, %s15_s18  }
   0x2   : > { %p188_p1 = scmp.lt.s32.totalorder %s709_s18, 3 }
   0x4   : > { %p189_p2 = pnand %p580_p0, %p188_p1 }
   0x5   : > { %s216_s22 = smul.u32 (!%p189_p2), 7, %s576_s19 }
   0x6   : > { %192 = sbr.rel (%p189_p2) target bundleno = 445 (0x1bd), region = 40 }
   0x7   : > { %p217_p3 = scmp.lt.s32.totalorder (!%p189_p2), %s216_s22, 13 }
   0xb   : > { %v242_v0 = vld [vmem:[%s871_s1 + $0x38] sm:$0xff]  ;;  %v711_v1 = vmov 0.0   ;;  %v241_v2 = vld [vmem:[%s871_s1 + $0x30] sm:$0xff]  ;;  %vm712_vm0 = vmmov 0   ;;  %v240_v4 = vld [vmem:[%s871_s1 + $0x28] sm:$0xff]  ;;  %s877_s22 = smov (!%p217_p3, %s216_s22), 13 }
   0xc   : > { %627 = vmatprep.subr.mxu0 %v711_v1  ;;  %643 = vmatprep.mubr.msk.f32.mxu0 %vm712_vm0, %v711_v1  ;;  %v382_v3 = vld [vmem:[%s873_s3 + $0x18] sm:$0xff]  ;;  %v239_v5 = vld [vmem:[%s871_s1 + $0x20] sm:$0xff]  ;;  %s581_s8 = sshll.u32 %s877_s22, 3  ;;  %v237_v7 = vld [vmem:[%s871_s1 + $0x10] sm:$0xff]  ;;  %vm250_vm1 = vcmask 523264   ;;  %vm390_vm2 = vcmask 261120  }
   0xd   : > { %628 = vmatpush3.msra.mxu0 %v242_v0  ;;  %664 = vmatprep.subr.mxu1 %v711_v1  ;;  %v238_v6 = vld [vmem:[%s871_s1 + $0x18] sm:$0xff]  ;;  %v236_v8 = vld [vmem:[%s871_s1 + $0x8] sm:$0xff]  ;;  %s220_s15 = scalar_lea.vmem %s870_s0, %s581_s8  ;;  %v235_v9 = vld [vmem:[%s871_s1] sm:$0xff]  ;;  %s226_s7 = scalar_lea.vmem %s875_s5, %s581_s8  ;;  %vm512_vm3 = vcmask 64512  }
   0xe   : > { %629 = vmatprep.subr.mxu0 %v711_v1  ;;  %665 = vmatpush3.msra.mxu1 %v382_v3  ;;  %v228_v10 = vld [vmem:[%s220_s15] sm:$0xff]  ;;  %v229_v11 = vld [vmem:[%s220_s15 + $0x8] sm:$0xff]  ;;  %v230_v12 = vld [vmem:[%s220_s15 + $0x10] sm:$0xff] }
   0xf   : > { %630 = vmatpush3.msra.mxu0 %v241_v2  ;;  %666 = vmatprep.subr.mxu1 %v711_v1  ;;  %v231_v13 = vld [vmem:[%s220_s15 + $0x18] sm:$0xff]  ;;  %v232_v14 = vld [vmem:[%s220_s15 + $0x20] sm:$0xff]  ;;  %v233_v15 = vld [vmem:[%s220_s15 + $0x28] sm:$0xff] }
  0x10   : > { %631 = vmatprep.subr.mxu0 %v711_v1  ;;  %672 = vmatprep.mubr.msk.f32.mxu1 %vm712_vm0, %v711_v1  ;;  %v234_v16 = vld [vmem:[%s220_s15 + $0x30] sm:$0xff]  ;;  %v380_v18 = vld [vmem:[%s873_s3 + $0x8] sm:$0xff]  ;;  %v379_v19 = vld [vmem:[%s873_s3] sm:$0xff] }
  0x11   : > { %632 = vmatpush3.msra.mxu0 %v240_v4  ;;  %v381_v17 = vld [vmem:[%s873_s3 + $0x10] sm:$0xff]  ;;  %v583_v20 = vld [vmem:[%s872_s2] ss:$0 sm:$0xff] }
  0x12   : > { %633 = vmatprep.subr.mxu0 %v711_v1  ;;  %667 = vmatpush3.msra.mxu1 %v381_v17  ;;  %v591_v49 = vld [vmem:[%s874_s4] ss:$0 sm:$0xff] }
  0x13   : > { %634 = vmatpush3.msra.mxu0 %v239_v5  ;;  %668 = vmatprep.subr.mxu1 %v711_v1 }
  0x14   : > { %635 = vmatprep.subr.mxu0 %v711_v1  ;;  %669 = vmatpush3.msra.mxu1 %v380_v18 }
  0x15   : > { %636 = vmatpush3.msra.mxu0 %v238_v6  ;;  %670 = vmatprep.subr.mxu1 %v711_v1 }
  0x16   : > { %637 = vmatprep.subr.mxu0 %v711_v1  ;;  %671 = vmatpush3.msra.mxu1 %v379_v19 }
  0x17   : > { %638 = vmatpush3.msra.mxu0 %v237_v7 }
  0x18   : > { %639 = vmatprep.subr.mxu0 %v711_v1 }
  0x19   : > { %640 = vmatpush3.msra.mxu0 %v236_v8 }
  0x1a   : > { %641 = vmatprep.subr.mxu0 %v711_v1 }
  0x1b   : > { %642 = vmatpush3.msra.mxu0 %v235_v9 }
  0x1c   : > { %644 = vmatmul.mubr.msk.f32.vlgmr.msra.gmra.mxu0 %vm250_vm1, %v228_v10 }
  0x1d   : > { %646 = vmatprep.mubr.msk.f32.mxu0 %vm712_vm0, %v711_v1 }
  0x20   : > { %647 = vmatmul.mubr.msk.f32.gmra.mxu0 %vm250_vm1, %v229_v11 }
  0x21   : > { %649 = vmatprep.mubr.msk.f32.mxu0 %vm712_vm0, %v711_v1 }
  0x24   : > { %650 = vmatmul.mubr.msk.f32.gmra.mxu0 %vm250_vm1, %v230_v12 }
  0x25   : > { %652 = vmatprep.mubr.msk.f32.mxu0 %vm712_vm0, %v711_v1 }
  0x28   : > { %653 = vmatmul.mubr.msk.f32.gmra.mxu0 %vm250_vm1, %v231_v13 }
  0x29   : > { %655 = vmatprep.mubr.msk.f32.mxu0 %vm712_vm0, %v711_v1 }
  0x2c   : > { %656 = vmatmul.mubr.msk.f32.gmra.mxu0 %vm250_vm1, %v232_v14 }
  0x2d   : > { %658 = vmatprep.mubr.msk.f32.mxu0 %vm712_vm0, %v711_v1 }
  0x30   : > { %659 = vmatmul.mubr.msk.f32.gmra.mxu0 %vm250_vm1, %v233_v15 }
  0x31   : > { %661 = vmatprep.mubr.msk.f32.mxu0 %vm712_vm0, %v711_v1 }
  0x34   : > { %662 = vmatmul.mubr.msk.f32.gmra.mxu0 %vm250_vm1, %v234_v16 }
  0xdc   : > { %v338_v21 = vpop.f32.mrf.mxu0 }
  0xdd   : > { %v339_v22 = vadd.f32 %v583_v20, %v338_v21 }
  0xde   : > { %v645_v23 = vpop.f32.mrf.mxu0 }
  0xdf   : > { %v372_v24 = vmax.f32 %v339_v22, 0.0 }
  0xe0   : > { %v343_v25 = vpop.f32.mrf.mxu0 }
  0xe1   : > { %v344_v26 = vadd.f32 %v583_v20, %v343_v25  ;;  %673 = vmatmul.mubr.msk.f32.vlgmr.msra.gmra.mxu1 %vm390_vm2, %v372_v24 }
  0xe2   : > { %v648_v27 = vpop.f32.mrf.mxu0  ;;  %675 = vmatprep.mubr.msk.f32.mxu1 %vm712_vm0, %v711_v1 }
  0xe3   : > { %v373_v28 = vmax.f32 %v344_v26, 0.0 }
  0xe4   : > { %v348_v29 = vpop.f32.mrf.mxu0 }
  0xe5   : > { %v349_v30 = vadd.f32 %v583_v20, %v348_v29  ;;  %676 = vmatmul.mubr.msk.f32.gmra.mxu1 %vm390_vm2, %v373_v28 }
  0xe6   : > { %v651_v31 = vpop.f32.mrf.mxu0  ;;  %678 = vmatprep.mubr.msk.f32.mxu1 %vm712_vm0, %v711_v1 }
  0xe7   : > { %v374_v32 = vmax.f32 %v349_v30, 0.0 }
  0xe8   : > { %v353_v33 = vpop.f32.mrf.mxu0 }
  0xe9   : > { %v354_v34 = vadd.f32 %v583_v20, %v353_v33  ;;  %679 = vmatmul.mubr.msk.f32.gmra.mxu1 %vm390_vm2, %v374_v32 }
  0xea   : > { %v654_v35 = vpop.f32.mrf.mxu0  ;;  %681 = vmatprep.mubr.msk.f32.mxu1 %vm712_vm0, %v711_v1 }
  0xeb   : > { %v375_v36 = vmax.f32 %v354_v34, 0.0 }
  0xec   : > { %v358_v37 = vpop.f32.mrf.mxu0 }
  0xed   : > { %v359_v38 = vadd.f32 %v583_v20, %v358_v37  ;;  %682 = vmatmul.mubr.msk.f32.gmra.mxu1 %vm390_vm2, %v375_v36 }
  0xee   : > { %v657_v39 = vpop.f32.mrf.mxu0  ;;  %684 = vmatprep.mubr.msk.f32.mxu1 %vm712_vm0, %v711_v1 }
  0xef   : > { %v376_v40 = vmax.f32 %v359_v38, 0.0 }
  0xf0   : > { %v363_v41 = vpop.f32.mrf.mxu0 }
  0xf1   : > { %v364_v42 = vadd.f32 %v583_v20, %v363_v41  ;;  %685 = vmatmul.mubr.msk.f32.gmra.mxu1 %vm390_vm2, %v376_v40 }
  0xf2   : > { %v660_v43 = vpop.f32.mrf.mxu0  ;;  %687 = vmatprep.mubr.msk.f32.mxu1 %vm712_vm0, %v711_v1 }
  0xf3   : > { %v377_v44 = vmax.f32 %v364_v42, 0.0 }
  0xf4   : > { %v368_v45 = vpop.f32.mrf.mxu0 }
  0xf5   : > { %v369_v46 = vadd.f32 %v583_v20, %v368_v45  ;;  %688 = vmatmul.mubr.msk.f32.gmra.mxu1 %vm390_vm2, %v377_v44 }
  0xf6   : > { %v663_v47 = vpop.f32.mrf.mxu0  ;;  %690 = vmatprep.mubr.msk.f32.mxu1 %vm712_vm0, %v711_v1 }
  0xf7   : > { %v378_v48 = vmax.f32 %v369_v46, 0.0 }
  0xf9   : > { %691 = vmatmul.mubr.msk.f32.gmra.mxu1 %vm390_vm2, %v378_v48 }
 0x1a1   : > { %v478_v50 = vpop.f32.mrf.mxu1 }
 0x1a2   : > { %v479_v51 = vadd.f32 %v591_v49, %v478_v50 }
 0x1a3   : > { %v674_v52 = vpop.f32.mrf.mxu1 }
 0x1a4   : > { %513 = vst.msk [vmem:[%s226_s7] sm:$0xff] %vm512_vm3, %v479_v51 }
 0x1a5   : > { %v483_v53 = vpop.f32.mrf.mxu1 }
 0x1a6   : > { %v484_v54 = vadd.f32 %v591_v49, %v483_v53 }
 0x1a7   : > { %v677_v55 = vpop.f32.mrf.mxu1 }
 0x1a8   : > { %514 = vst.msk [vmem:[%s226_s7 + $0x8] sm:$0xff] %vm512_vm3, %v484_v54 }
 0x1a9   : > { %v488_v56 = vpop.f32.mrf.mxu1 }
 0x1aa   : > { %v489_v57 = vadd.f32 %v591_v49, %v488_v56 }
 0x1ab   : > { %v680_v58 = vpop.f32.mrf.mxu1 }
 0x1ac   : > { %515 = vst.msk [vmem:[%s226_s7 + $0x10] sm:$0xff] %vm512_vm3, %v489_v57 }
 0x1ad   : > { %v493_v59 = vpop.f32.mrf.mxu1 }
 0x1ae   : > { %v494_v60 = vadd.f32 %v591_v49, %v493_v59 }
 0x1af   : > { %v683_v61 = vpop.f32.mrf.mxu1 }
 0x1b0   : > { %516 = vst.msk [vmem:[%s226_s7 + $0x18] sm:$0xff] %vm512_vm3, %v494_v60 }
 0x1b1   : > { %v498_v62 = vpop.f32.mrf.mxu1 }
 0x1b2   : > { %v499_v63 = vadd.f32 %v591_v49, %v498_v62 }
 0x1b3   : > { %v686_v0 = vpop.f32.mrf.mxu1 }
 0x1b4   : > { %517 = vst.msk [vmem:[%s226_s7 + $0x20] sm:$0xff] %vm512_vm3, %v499_v63 }
 0x1b5   : > { %v503_v1 = vpop.f32.mrf.mxu1 }
 0x1b6   : > { %v504_v2 = vadd.f32 %v591_v49, %v503_v1 }
 0x1b7   : > { %v689_v3 = vpop.f32.mrf.mxu1 }
 0x1b8   : > { %518 = vst.msk [vmem:[%s226_s7 + $0x28] sm:$0xff] %vm512_vm3, %v504_v2 }
 0x1b9   : > { %v508_v4 = vpop.f32.mrf.mxu1 }
 0x1ba   : > { %v509_v5 = vadd.f32 %v591_v49, %v508_v4 }
 0x1bb   : > { %v692_v6 = vpop.f32.mrf.mxu1 }
 0x1bc   : > { %519 = vst.msk [vmem:[%s226_s7 + $0x30] sm:$0xff] %vm512_vm3, %v509_v5 }
 0x1bd PF: > { %s15_s18 = sadd.s32 1, %s709_s18  }
 0x1be   : > { %p12_p4 = scmp.ge.s32.totalorder %s15_s18, 4  }
 0x1c0   :  { %14 = sbr.rel (!%p12_p4) target bundleno = 1 (0x1), region = 70 }

</bundles_post_ra>
